<compile_context>
chip_gen: v5e
topology: v5e:2x2
jax: 0.10.0
libtpu: 0.0.40
codegen_flags: <defaults>
</compile_context>

<pallas_src>
import functools
import math

import jax
import jax.numpy as jnp
import numpy as np
from jax.experimental import pallas as pl
from jax.experimental.pallas import tpu as pltpu


def _add_pe_kernel(x_ref, pe_ref, o_ref):
    # x_ref: (bt, nt) tile of the input; pe_ref: (1, nt) PE tile (block index is
    # constant over the inner batch grid axis -> stays resident in VMEM).
    # Pure elementwise VPU add; broadcasts PE over the batch (sublane) axis.
    o_ref[...] = x_ref[...] + pe_ref[...]


@functools.lru_cache(maxsize=16)
def _positionalencoding1d_np(d_model: int, length: int):
    """Cached numpy equivalent of the PyTorch positionalencoding1d."""
    if d_model % 2 != 0:
        raise ValueError(
            "Cannot use sin/cos positional encoding with odd dim (got dim={:d})".format(d_model)
        )
    pe = np.zeros((length, d_model), dtype=np.float32)
    position = np.arange(0, length, dtype=np.float32)[:, None]
    div_term = np.exp(
        np.arange(0, d_model, 2, dtype=np.float32) * -(math.log(10000.0) / d_model)
    )
    pe[:, 0::2] = np.sin(position * div_term)
    pe[:, 1::2] = np.cos(position * div_term)
    return pe


def _divisors(n):
    divs = set()
    i = 1
    while i * i <= n:
        if n % i == 0:
            divs.add(i)
            divs.add(n // i)
        i += 1
    return sorted(divs)


def _pick_lane_tile(Np, itemsize, rows, target_block_bytes):
    """Largest multiple-of-128 divisor of Np such that a `rows`-row block fits budget."""
    max_elems = max(128, target_block_bytes // max(1, rows * itemsize))
    cands = [128 * d for d in _divisors(Np // 128) if 128 * d <= max_elems]
    return max(cands) if cands else 128


def _pick_batch_tile(B, nt, itemsize, sublane, target_block_bytes, lane_steps):
    """Batch tile bt: divides B, is a legal sublane multiple (or == B), keeps the
    (bt, nt) block under target_block_bytes; prefers an even total grid-step count
    (v7x megacore split) and >= 2 steps (pipelining)."""
    if B <= sublane:
        return B
    legal = [d for d in _divisors(B) if d % sublane == 0 or d == B]
    fit = [d for d in legal if d * nt * itemsize <= target_block_bytes]
    cands = fit if fit else [min(legal)]
    even = [d for d in cands if ((B // d) * lane_steps) % 2 == 0]
    if even:
        return max(even)
    multi = [d for d in cands if (B // d) * lane_steps >= 2]
    if multi:
        return max(multi)
    return max(cands)


def feature_embedder_forward(x, *, target_block_bytes=2 << 20):
    """FeatureEmbedder.forward (metadata=None): out = x + positionalencoding1d(F, S)."""
    B, S, F = x.shape
    dtype = x.dtype
    itemsize = jnp.dtype(dtype).itemsize
    # Sub-32-bit dtypes pack along sublanes: legal sublane granule = 8 * 4 / itemsize.
    sublane = max(1, (8 * 4) // itemsize)

    pe = jnp.asarray(_positionalencoding1d_np(F, S), dtype=dtype)  # (S, F), cached

    # Flatten trailing (S, F) -> N and pad to a multiple of 128 so the output's
    # last dim is always lane-dense (unmasked vst); padded tail is sliced off.
    N = S * F
    Np = ((N + 127) // 128) * 128
    x_flat = x.reshape(B, N)
    pe_flat = pe.reshape(1, N)
    if Np != N:
        x_flat = jnp.pad(x_flat, ((0, 0), (0, Np - N)))
        pe_flat = jnp.pad(pe_flat, ((0, 0), (0, Np - N)))

    # Tile selection: lane tile first (budgeted for `sublane` rows), then batch tile.
    nt = _pick_lane_tile(Np, itemsize, sublane, target_block_bytes)
    lane_steps = Np // nt
    bt = _pick_batch_tile(B, nt, itemsize, sublane, target_block_bytes, lane_steps)
    if bt * nt * itemsize > target_block_bytes:
        # bt was forced (no divisor of B gives a legal tile that fits) -> shrink
        # the lane tile instead so the block stays within the VMEM budget.
        nt = _pick_lane_tile(Np, itemsize, bt, target_block_bytes)
        lane_steps = Np // nt
    batch_steps = B // bt

    cost = pl.CostEstimate(
        flops=B * S * F,
        transcendentals=0,
        bytes_accessed=(2 * B * Np + Np) * itemsize,
    )

    out = pl.pallas_call(
        _add_pe_kernel,
        out_shape=jax.ShapeDtypeStruct((B, Np), dtype),
        grid_spec=pltpu.PrefetchScalarGridSpec(
            num_scalar_prefetch=0,
            # Lane axis outermost: the PE block index only changes with it, so the
            # PE slice is fetched once per lane step (total PE traffic ~= N elems)
            # and stays resident across the inner batch steps.
            grid=(lane_steps, batch_steps),
            in_specs=[
                pl.BlockSpec((bt, nt), lambda n, b: (b, n)),
                pl.BlockSpec((1, nt), lambda n, b: (0, n)),
            ],
            out_specs=pl.BlockSpec((bt, nt), lambda n, b: (b, n)),
        ),
        compiler_params=pltpu.CompilerParams(
            dimension_semantics=("parallel", "parallel"),
            # ~2 MiB blocks, double-buffered x/out + small PE tile stay far below
            # 32 MiB on every generation (v5e scoped default is only 16 MiB;
            # v7x physical VMEM is 64 MiB).
            vmem_limit_bytes=32 << 20,
        ),
        cost_estimate=cost,
        # Donate the flattened input buffer to the output (same shape/dtype).
        input_output_aliases={0: 0},
    )(x_flat, pe_flat)

    if Np != N:
        out = out[:, :N]
    return out.reshape(B, S, F)


if __name__ == "__main__":
    # Small shapes consistent with forward: (batch, seq_len, feat_dim)
    B, S, F = 2, 8, 32
    key = jax.random.PRNGKey(0)
    x = jax.random.normal(key, (B, S, F), dtype=jnp.float32)
    x_host = np.asarray(x)

    out = jax.block_until_ready(feature_embedder_forward(x))

    # Reference check against the PyTorch semantics (x + broadcast PE).
    ref = x_host + _positionalencoding1d_np(F, S)[None, :, :]
    np.testing.assert_allclose(np.asarray(out), ref, rtol=1e-5, atol=1e-5)

    # Also exercise the pad-to-128 path (S*F not a multiple of 128).
    B2, S2, F2 = 2, 4, 6
    x2 = jax.random.normal(jax.random.PRNGKey(1), (B2, S2, F2), dtype=jnp.float32)
    x2_host = np.asarray(x2)
    out2 = jax.block_until_ready(feature_embedder_forward(x2))
    ref2 = x2_host + _positionalencoding1d_np(F2, S2)[None, :, :]
    np.testing.assert_allclose(np.asarray(out2), ref2, rtol=1e-5, atol=1e-5)

    # TODO(synk): metadata-concat path and multiply_weights are unused in the
    # module's forward with metadata=None (the default); only that path is implemented.
    print("KERNEL_OK")
</pallas_src>

<mosaic_0001>
module attributes {stable_mosaic.version = 11 : i64} {
  func.func @_add_pe_kernel(%arg0: i32, %arg1: i32, %arg2: memref<2x256xf32, #tpu.memory_space<vmem>>, %arg3: memref<1x256xf32, #tpu.memory_space<vmem>>, %arg4: memref<2x256xf32, #tpu.memory_space<vmem>>) attributes {dimension_semantics = [#tpu.dimension_semantics<parallel>, #tpu.dimension_semantics<parallel>], iteration_bounds = array<i64: 1, 1>, scalar_prefetch = 0 : i64, scratch_operands = 0 : i64, tpu.core_type = #tpu.core_type<tc>, window_params = [{transform_indices = @transform_0, window_bounds = array<i64: 2, 256>}, {transform_indices = @transform_1, window_bounds = array<i64: 1, 256>}, {transform_indices = @transform_2, window_bounds = array<i64: 2, 256>}]} {
    %c0 = arith.constant 0 : index
    %c0_0 = arith.constant 0 : index
    %0 = vector.load %arg2[%c0, %c0_0] : memref<2x256xf32, #tpu.memory_space<vmem>>, vector<2x256xf32>
    %c0_1 = arith.constant 0 : index
    %c0_2 = arith.constant 0 : index
    %1 = vector.load %arg3[%c0_1, %c0_2] : memref<1x256xf32, #tpu.memory_space<vmem>>, vector<1x256xf32>
    %2 = vector.broadcast %1 : vector<1x256xf32> to vector<2x256xf32>
    %3 = arith.addf %0, %2 : vector<2x256xf32>
    %c0_3 = arith.constant 0 : index
    %c0_4 = arith.constant 0 : index
    %4 = vector.load %arg4[%c0_3, %c0_4] : memref<2x256xf32, #tpu.memory_space<vmem>>, vector<2x256xf32>
    tpu.vector_store %arg4[%c0_3, %c0_4], %3 {strides = array<i32>} : memref<2x256xf32, #tpu.memory_space<vmem>>, vector<2x256xf32>,
    return
  }
  func.func @transform_0(%arg0: i32, %arg1: i32) -> (i32, i32) {
    %c0_i32 = arith.constant 0 : i32
    return %arg1, %arg0 : i32, i32
  }
  func.func @transform_1(%arg0: i32, %arg1: i32) -> (i32, i32) {
    %c0_i32 = arith.constant 0 : i32
    %c0_i32_0 = arith.constant 0 : i32
    return %c0_i32, %arg0 : i32, i32
  }
  func.func @transform_2(%arg0: i32, %arg1: i32) -> (i32, i32) {
    %c0_i32 = arith.constant 0 : i32
    return %arg1, %arg0 : i32, i32
  }
}

</mosaic_0001>

<bundles_post_ra>
// kernel: tpu_custom_call.1
= control target key start
LH: loop header
LB: loop body
LE: loop exit
PB: predicated region body
PF: predicated region fallthrough
CT: control target
= control target key end

     0   :  { %7 = vsyncpa [#allocation3], 0  ;;  %s134_s0 = inlined_call_operand.hbm [shape: f32[2,256], index: 0, kind: input, shape index: {}, may-alias: {0,2}]   ;;  %s135_s1 = inlined_call_operand.vmem [shape: f32[1,256], index: 1, kind: input, shape index: {}]   ;;  %s136_s2 = inlined_call_operand.hbm [shape: f32[2,256], index: 2, kind: output, shape index: {}, may-alias: {0,2}]  }
   0x1   :  { %8 = vsyncpa [#allocation4], 0  ;;  %s14_s11 = sshll.u32 %s134_s0, 4  ;;  %s108_s12 = smov [#allocation2]   ;;  %s15_s11 = int_to_ptr.hbm [resolvable:$true] %s14_s11 }
   0x2   :  { %s16_s13 = sshll.u32 %s108_s12, 4  ;;  %s17_s13 = int_to_ptr.vmem [resolvable:$true] %s16_s13 }
   0x3   :  { %19 = dma.hbm_to_vmem [thread:$0]  %s15_s11, 64, %s17_s13, [#allocation3]  }
   0x4   :  { %104 = dma.done.wait [#allocation3], 64  }
   0x5   :  { %105 = vsyncadd [#allocation3], 4294967232  ;;  %v27_v0 = vld [vmem:[%s135_s1] sm:$0x3]  ;;  %vm32_vm0 = vcmask 1041408   ;;  %s109_s16 = smov [#allocation5]  }
   0x6   :  { %v29_v1 = vperm.slane %v27_v0, 0  ;;  %v30_v2 = vperm.slane %v27_v0, 1  ;;  %v26_v3 = vld [vmem:[#allocation2] sm:$0xf]  ;;  %s42_s17 = sshll.u32 %s109_s16, 4  ;;  %s44_s19 = sshll.u32 %s136_s2, 4  ;;  %s43_s17 = int_to_ptr.vmem [resolvable:$true] %s42_s17  ;;  %s45_s19 = int_to_ptr.hbm [resolvable:$true] %s44_s19 }
   0x8   :  { %v31_v4 = vrot.slane %v30_v2, 6 }
   0xa   :  { %v33_v5 = vsel %vm32_vm0, %v29_v1, %v31_v4 }
   0xb   :  { %v35_v6 = vadd.f32 %v33_v5, %v26_v3 }
   0xd   :  { %36 = vst [vmem:[#allocation5] sm:$0xf] %v35_v6 }
   0xe   :  { %47 = dma.vmem_to_hbm [thread:$0]  %s43_s17, 64, %s45_s19, [#allocation4]  }
   0xf   :  { %106 = dma.done.wait [#allocation4], 64  }
  0x10   :  { %107 = vsyncadd [#allocation4], 4294967232 }
  0x11   :  { %52 = vsyncpa [#allocation3], 1 }
  0x12   :  { %53 = vsyncpa [#allocation4], 1 }

</bundles_post_ra>
